<compile_context>
chip_gen: v5e
topology: v5e:2x2
jax: 0.10.0
libtpu: 0.0.40
codegen_flags: <defaults>
</compile_context>

<pallas_src>
import functools

import jax
import jax.numpy as jnp
from jax.experimental import pallas as pl
from jax.experimental.pallas import tpu as pltpu

LN_EPS = 1e-5


def mask_block_kernel(x_ref, out_in_ref,
                      w_agg_ref, b_agg_ref,
                      w_proj_ref, b_proj_ref,
                      w_hid_ref,
                      gamma_ref, beta_ref,
                      o_ref, *, d_out, ln_eps):
    f32 = jnp.float32

    x = x_ref[...]                       # (TB, D_in)   matmul dtype (bf16/f32)
    out_in = out_in_ref[...]             # (TB, D_mask)

    # InstanceGuidedMask: Linear -> ReLU -> Linear  (MXU, f32 accumulation)
    agg = jnp.dot(x, w_agg_ref[...], preferred_element_type=f32)
    agg = agg + b_agg_ref[...]           # (TB, H)  f32
    agg = jnp.maximum(agg, 0.0)
    mask = jnp.dot(agg.astype(w_proj_ref.dtype), w_proj_ref[...],
                   preferred_element_type=f32)
    mask = mask + b_proj_ref[...]        # (TB, D_mask)  f32

    # masked feature + hidden projection (no bias)
    y = mask * out_in.astype(f32)        # elementwise in f32 (VPU)
    h = jnp.dot(y.astype(w_hid_ref.dtype), w_hid_ref[...],
                preferred_element_type=f32)   # (TB, Dp)  f32

    # LayerNorm over the *true* d_out.  Padded columns of h are exactly zero
    # (w_hid columns were zero-padded), so the sum is unaffected; only the
    # squared deviations need masking when padding is present.
    dp = h.shape[-1]
    inv_d = 1.0 / d_out
    mean = jnp.sum(h, axis=-1, keepdims=True) * inv_d
    centered = h - mean
    if dp != d_out:
        col = jax.lax.broadcasted_iota(jnp.int32, h.shape, 1)
        sq = jnp.where(col < d_out, centered * centered, 0.0)
    else:
        sq = centered * centered
    var = jnp.sum(sq, axis=-1, keepdims=True) * inv_d
    norm = centered * jax.lax.rsqrt(var + ln_eps)
    ln = norm * gamma_ref[...] + beta_ref[...]   # padded gamma/beta are 0

    # final ReLU; full-lane (unmasked) store
    o_ref[...] = jnp.maximum(ln, 0.0).astype(o_ref.dtype)


def mask_block(x, output, params, *, tb=256, matmul_dtype=jnp.bfloat16,
               pad_output_lanes=True):
    """x: (B, D_in), output: (B, D_mask) -> (B, D_out) float32."""
    B, D_in = x.shape
    D_mask = output.shape[1]
    H = params["w_agg"].shape[1]
    D_out = params["w_hid"].shape[1]
    f32 = jnp.float32

    # ---- batch tiling: big tiles amortize per-grid-step cost; keep the tile
    # a multiple of the sublane packing for the chosen matmul dtype, and pad
    # the batch so it divides evenly (padded rows are sliced off at the end).
    itemsize = jnp.dtype(matmul_dtype).itemsize
    row_mult = 32 if itemsize == 1 else (16 if itemsize == 2 else 8)
    tb = max(row_mult, min(tb, ((B + row_mult - 1) // row_mult) * row_mult))
    assert tb % row_mult == 0
    Bp = ((B + tb - 1) // tb) * tb

    # ---- lane-dense output: pad D_out up to a multiple of 128.
    if pad_output_lanes and D_out % 128 != 0:
        Dp = ((D_out + 127) // 128) * 128
    else:
        Dp = D_out

    # ---- parameter / input staging (bf16 matmul operands, f32 bias/LN)
    w_agg = params["w_agg"].astype(matmul_dtype)
    w_proj = params["w_proj"].astype(matmul_dtype)
    w_hid = params["w_hid"].astype(matmul_dtype)
    b_agg = params["b_agg"].reshape(1, H).astype(f32)
    b_proj = params["b_proj"].reshape(1, D_mask).astype(f32)
    gamma = params["gamma"].reshape(1, D_out).astype(f32)
    beta = params["beta"].reshape(1, D_out).astype(f32)
    if Dp != D_out:
        w_hid = jnp.pad(w_hid, ((0, 0), (0, Dp - D_out)))
        gamma = jnp.pad(gamma, ((0, 0), (0, Dp - D_out)))
        beta = jnp.pad(beta, ((0, 0), (0, Dp - D_out)))

    x_c = x.astype(matmul_dtype)          # halves input DMA bytes for bf16
    out_c = output.astype(matmul_dtype)
    if Bp != B:
        x_c = jnp.pad(x_c, ((0, Bp - B), (0, 0)))
        out_c = jnp.pad(out_c, ((0, Bp - B), (0, 0)))

    grid = (Bp // tb,)
    full = lambda r, c: pl.BlockSpec((r, c), lambda i: (0, 0))

    kernel = functools.partial(mask_block_kernel, d_out=D_out, ln_eps=LN_EPS)

    # ---- cost estimate for XLA scheduling around the custom call
    nbytes = lambda a: a.size * a.dtype.itemsize
    bytes_accessed = (nbytes(x_c) + nbytes(out_c) + nbytes(w_agg)
                      + nbytes(b_agg) + nbytes(w_proj) + nbytes(b_proj)
                      + nbytes(w_hid) + nbytes(gamma) + nbytes(beta)
                      + Bp * Dp * 4)
    flops = 2 * Bp * (D_in * H + H * D_mask + D_mask * Dp)
    cost = pl.CostEstimate(flops=flops, transcendentals=Bp,
                           bytes_accessed=bytes_accessed)

    # ---- VMEM budget: BlockSpec double-buffers every operand.  Only raise
    # the scoped-VMEM limit when the default (32 MiB on v6e/v7x) is too small.
    tile_bytes = 2 * (tb * D_in * itemsize + tb * D_mask * itemsize + tb * Dp * 4)
    weight_bytes = 2 * (nbytes(w_agg) + nbytes(b_agg) + nbytes(w_proj)
                        + nbytes(b_proj) + nbytes(w_hid) + nbytes(gamma)
                        + nbytes(beta))
    vmem_needed = int(1.25 * (tile_bytes + weight_bytes))
    cp_kwargs = dict(dimension_semantics=("parallel",))
    if vmem_needed > 32 * 1024 * 1024:
        cp_kwargs["vmem_limit_bytes"] = min(vmem_needed, 100 * 1024 * 1024)

    out_padded = pl.pallas_call(
        kernel,
        out_shape=jax.ShapeDtypeStruct((Bp, Dp), f32),
        grid_spec=pltpu.PrefetchScalarGridSpec(
            num_scalar_prefetch=0,
            grid=grid,
            in_specs=[
                pl.BlockSpec((tb, D_in), lambda i: (i, 0)),    # x
                pl.BlockSpec((tb, D_mask), lambda i: (i, 0)),  # output (masked feat)
                full(D_in, H),        # w_agg
                full(1, H),           # b_agg
                full(H, D_mask),      # w_proj
                full(1, D_mask),      # b_proj
                full(D_mask, Dp),     # w_hid (zero-padded cols)
                full(1, Dp),          # gamma (zero-padded)
                full(1, Dp),          # beta  (zero-padded)
            ],
            out_specs=pl.BlockSpec((tb, Dp), lambda i: (i, 0)),
        ),
        compiler_params=pltpu.CompilerParams(**cp_kwargs),
        cost_estimate=cost,
    )(x_c, out_c, w_agg, b_agg, w_proj, b_proj, w_hid, gamma, beta)

    if Bp != B:
        out_padded = out_padded[:B]
    return out_padded[:, :D_out] if Dp != D_out else out_padded


def make_params(key, d_in, h, d_mask, d_out, dtype=jnp.float32):
    ks = jax.random.split(key, 5)
    # deterministic synthetic init (roughly PyTorch-Linear-like scaling)
    w_agg = jax.random.uniform(ks[0], (d_in, h), dtype, -1, 1) / jnp.sqrt(d_in)
    b_agg = jax.random.uniform(ks[1], (1, h), dtype, -1, 1) / jnp.sqrt(d_in)
    w_proj = jax.random.uniform(ks[2], (h, d_mask), dtype, -1, 1) / jnp.sqrt(h)
    b_proj = jax.random.uniform(ks[3], (1, d_mask), dtype, -1, 1) / jnp.sqrt(h)
    w_hid = jax.random.uniform(ks[4], (d_mask, d_out), dtype, -1, 1) / jnp.sqrt(d_mask)
    gamma = jnp.ones((1, d_out), dtype)
    beta = jnp.zeros((1, d_out), dtype)
    return dict(w_agg=w_agg, b_agg=b_agg, w_proj=w_proj, b_proj=b_proj,
                w_hid=w_hid, gamma=gamma, beta=beta)


def mask_block_ref(x, output, p):
    """Pure-f32 reference (matches the PyTorch module numerics)."""
    agg = jnp.maximum(x @ p["w_agg"] + p["b_agg"], 0.0)
    mask = agg @ p["w_proj"] + p["b_proj"]
    y = mask * output
    h = y @ p["w_hid"]
    mean = h.mean(-1, keepdims=True)
    var = ((h - mean) ** 2).mean(-1, keepdims=True)
    ln = (h - mean) / jnp.sqrt(var + LN_EPS) * p["gamma"] + p["beta"]
    return jnp.maximum(ln, 0.0)


def mask_block_ref_mixed(x, output, p, matmul_dtype=jnp.bfloat16):
    """Reference using the same bf16-operand / f32-accumulate recipe as the kernel."""
    f32 = jnp.float32
    agg = jnp.dot(x.astype(matmul_dtype), p["w_agg"].astype(matmul_dtype),
                  preferred_element_type=f32) + p["b_agg"].astype(f32)
    agg = jnp.maximum(agg, 0.0)
    mask = jnp.dot(agg.astype(matmul_dtype), p["w_proj"].astype(matmul_dtype),
                   preferred_element_type=f32) + p["b_proj"].astype(f32)
    y = mask * output.astype(matmul_dtype).astype(f32)
    h = jnp.dot(y.astype(matmul_dtype), p["w_hid"].astype(matmul_dtype),
                preferred_element_type=f32)
    mean = h.mean(-1, keepdims=True)
    c = h - mean
    var = (c * c).mean(-1, keepdims=True)
    ln = c * jax.lax.rsqrt(var + LN_EPS) * p["gamma"].astype(f32) \
         + p["beta"].astype(f32)
    return jnp.maximum(ln, 0.0)


if __name__ == "__main__":
    # Small but tiling-meaningful shapes: grid = ceil(B / tb) = 2 blocks.
    B, D_in, H, D_mask, D_out = 256, 64, 64, 64, 64
    tb = 128

    key = jax.random.PRNGKey(0)
    kx, kout, kp = jax.random.split(key, 3)
    x = jax.random.normal(kx, (B, D_in), jnp.float32)
    output = jax.random.normal(kout, (B, D_mask), jnp.float32)
    params = make_params(kp, D_in, H, D_mask, D_out)

    # Default path: bf16 matmul operands, f32 accumulation / LayerNorm.
    y_bf16 = jax.block_until_ready(mask_block(x, output, params, tb=tb))
    # Full-f32 path (numerics of the original module).
    y_f32 = jax.block_until_ready(
        mask_block(x, output, params, tb=tb, matmul_dtype=jnp.float32))

    y_ref = mask_block_ref(x, output, params)
    y_ref_mixed = mask_block_ref_mixed(x, output, params)

    assert y_bf16.shape == (B, D_out) and y_f32.shape == (B, D_out)
    assert jnp.allclose(y_f32, y_ref, atol=5e-3, rtol=5e-3), \
        "f32 kernel mismatch vs f32 reference"
    assert jnp.allclose(y_bf16, y_ref_mixed, atol=5e-3, rtol=5e-3), \
        "bf16 kernel mismatch vs bf16-recipe reference"
    assert jnp.allclose(y_bf16, y_ref, atol=2e-1, rtol=2e-1), \
        "bf16 kernel drifted too far from f32 reference"

    print("KERNEL_OK")
</pallas_src>

<mosaic_0001>
module attributes {stable_mosaic.version = 11 : i64} {
  func.func @mask_block_kernel(%arg0: i32, %arg1: memref<128x64xbf16, #tpu.memory_space<vmem>>, %arg2: memref<128x64xbf16, #tpu.memory_space<vmem>>, %arg3: memref<64x64xbf16, #tpu.memory_space<vmem>>, %arg4: memref<1x64xf32, #tpu.memory_space<vmem>>, %arg5: memref<64x64xbf16, #tpu.memory_space<vmem>>, %arg6: memref<1x64xf32, #tpu.memory_space<vmem>>, %arg7: memref<64x128xbf16, #tpu.memory_space<vmem>>, %arg8: memref<1x128xf32, #tpu.memory_space<vmem>>, %arg9: memref<1x128xf32, #tpu.memory_space<vmem>>, %arg10: memref<128x128xf32, #tpu.memory_space<vmem>>) attributes {dimension_semantics = [#tpu.dimension_semantics<parallel>], iteration_bounds = array<i64: 2>, scalar_prefetch = 0 : i64, scratch_operands = 0 : i64, tpu.core_type = #tpu.core_type<tc>, window_params = [{transform_indices = @transform_0, window_bounds = array<i64: 128, 64>}, {transform_indices = @transform_1, window_bounds = array<i64: 128, 64>}, {pipeline_mode = #tpu.pipeline_mode<synchronous>, transform_indices = @transform_2, window_bounds = array<i64: 64, 64>}, {pipeline_mode = #tpu.pipeline_mode<synchronous>, transform_indices = @transform_3, window_bounds = array<i64: 1, 64>}, {pipeline_mode = #tpu.pipeline_mode<synchronous>, transform_indices = @transform_4, window_bounds = array<i64: 64, 64>}, {pipeline_mode = #tpu.pipeline_mode<synchronous>, transform_indices = @transform_5, window_bounds = array<i64: 1, 64>}, {pipeline_mode = #tpu.pipeline_mode<synchronous>, transform_indices = @transform_6, window_bounds = array<i64: 64, 128>}, {pipeline_mode = #tpu.pipeline_mode<synchronous>, transform_indices = @transform_7, window_bounds = array<i64: 1, 128>}, {pipeline_mode = #tpu.pipeline_mode<synchronous>, transform_indices = @transform_8, window_bounds = array<i64: 1, 128>}, {transform_indices = @transform_9, window_bounds = array<i64: 128, 128>}]} {
    %c0 = arith.constant 0 : index
    %c0_0 = arith.constant 0 : index
    %0 = vector.load %arg1[%c0, %c0_0] : memref<128x64xbf16, #tpu.memory_space<vmem>>, vector<128x64xbf16>
    %c0_1 = arith.constant 0 : index
    %c0_2 = arith.constant 0 : index
    %1 = vector.load %arg2[%c0_1, %c0_2] : memref<128x64xbf16, #tpu.memory_space<vmem>>, vector<128x64xbf16>
    %c0_3 = arith.constant 0 : index
    %c0_4 = arith.constant 0 : index
    %2 = vector.load %arg3[%c0_3, %c0_4] : memref<64x64xbf16, #tpu.memory_space<vmem>>, vector<64x64xbf16>
    %cst = arith.constant dense<0.000000e+00> : vector<128x64xf32>
    %3 = tpu.matmul %0, %2, %cst {dimension_numbers = #tpu.dot_dimension_numbers<[1], [0], [0], [1], [0, 0, 1, 1], [], []>} : vector<128x64xbf16>, vector<64x64xbf16>, vector<128x64xf32> -> vector<128x64xf32>
    %c0_5 = arith.constant 0 : index
    %c0_6 = arith.constant 0 : index
    %4 = vector.load %arg4[%c0_5, %c0_6] : memref<1x64xf32, #tpu.memory_space<vmem>>, vector<1x64xf32>
    %5 = vector.broadcast %4 : vector<1x64xf32> to vector<128x64xf32>
    %6 = arith.addf %3, %5 : vector<128x64xf32>
    %cst_7 = arith.constant 0.000000e+00 : f32
    %7 = vector.broadcast %cst_7 : f32 to vector<128x64xf32>
    %8 = arith.maximumf %6, %7 : vector<128x64xf32>
    %9 = arith.truncf %8 : vector<128x64xf32> to vector<128x64xbf16>
    %c0_8 = arith.constant 0 : index
    %c0_9 = arith.constant 0 : index
    %10 = vector.load %arg5[%c0_8, %c0_9] : memref<64x64xbf16, #tpu.memory_space<vmem>>, vector<64x64xbf16>
    %cst_10 = arith.constant dense<0.000000e+00> : vector<128x64xf32>
    %11 = tpu.matmul %9, %10, %cst_10 {dimension_numbers = #tpu.dot_dimension_numbers<[1], [0], [0], [1], [0, 0, 1, 1], [], []>} : vector<128x64xbf16>, vector<64x64xbf16>, vector<128x64xf32> -> vector<128x64xf32>
    %c0_11 = arith.constant 0 : index
    %c0_12 = arith.constant 0 : index
    %12 = vector.load %arg6[%c0_11, %c0_12] : memref<1x64xf32, #tpu.memory_space<vmem>>, vector<1x64xf32>
    %13 = vector.broadcast %12 : vector<1x64xf32> to vector<128x64xf32>
    %14 = arith.addf %11, %13 : vector<128x64xf32>
    %15 = arith.extf %1 : vector<128x64xbf16> to vector<128x64xf32>
    %16 = arith.mulf %14, %15 : vector<128x64xf32>
    %17 = arith.truncf %16 : vector<128x64xf32> to vector<128x64xbf16>
    %c0_13 = arith.constant 0 : index
    %c0_14 = arith.constant 0 : index
    %18 = vector.load %arg7[%c0_13, %c0_14] : memref<64x128xbf16, #tpu.memory_space<vmem>>, vector<64x128xbf16>
    %cst_15 = arith.constant dense<0.000000e+00> : vector<128x128xf32>
    %19 = tpu.matmul %17, %18, %cst_15 {dimension_numbers = #tpu.dot_dimension_numbers<[1], [0], [0], [1], [0, 0, 1, 1], [], []>} : vector<128x64xbf16>, vector<64x128xbf16>, vector<128x128xf32> -> vector<128x128xf32>
    %cst_16 = arith.constant dense<0.000000e+00> : vector<128xf32>
    %20 = vector.multi_reduction <add>, %19, %cst_16 [1] : vector<128x128xf32> to vector<128xf32>
    %21 = vector.shape_cast %20 : vector<128xf32> to vector<128x1xf32>
    %cst_17 = arith.constant 1.562500e-02 : f32
    %22 = vector.broadcast %cst_17 : f32 to vector<128x1xf32>
    %23 = arith.mulf %21, %22 : vector<128x1xf32>
    %24 = vector.broadcast %23 : vector<128x1xf32> to vector<128x128xf32>
    %25 = arith.subf %19, %24 : vector<128x128xf32>
    %26 = tpu.iota {dimensions = array<i32: 1>} : vector<128x128xi32>
    %c64_i32 = arith.constant 64 : i32
    %27 = vector.broadcast %c64_i32 : i32 to vector<128x128xi32>
    %28 = arith.cmpi slt, %26, %27 : vector<128x128xi32>
    %29 = arith.mulf %25, %25 : vector<128x128xf32>
    %cst_18 = arith.constant 0.000000e+00 : f32
    %30 = vector.broadcast %cst_18 : f32 to vector<128x128xf32>
    %31 = arith.select %28, %29, %30 : vector<128x128xi1>, vector<128x128xf32>
    %cst_19 = arith.constant dense<0.000000e+00> : vector<128xf32>
    %32 = vector.multi_reduction <add>, %31, %cst_19 [1] : vector<128x128xf32> to vector<128xf32>
    %33 = vector.shape_cast %32 : vector<128xf32> to vector<128x1xf32>
    %cst_20 = arith.constant 1.562500e-02 : f32
    %34 = vector.broadcast %cst_20 : f32 to vector<128x1xf32>
    %35 = arith.mulf %33, %34 : vector<128x1xf32>
    %cst_21 = arith.constant 9.99999974E-6 : f32
    %36 = vector.broadcast %cst_21 : f32 to vector<128x1xf32>
    %37 = arith.addf %35, %36 : vector<128x1xf32>
    %38 = math.rsqrt %37 : vector<128x1xf32>
    %39 = vector.broadcast %38 : vector<128x1xf32> to vector<128x128xf32>
    %40 = arith.mulf %25, %39 : vector<128x128xf32>
    %c0_22 = arith.constant 0 : index
    %c0_23 = arith.constant 0 : index
    %41 = vector.load %arg8[%c0_22, %c0_23] : memref<1x128xf32, #tpu.memory_space<vmem>>, vector<1x128xf32>
    %42 = vector.broadcast %41 : vector<1x128xf32> to vector<128x128xf32>
    %43 = arith.mulf %40, %42 : vector<128x128xf32>
    %c0_24 = arith.constant 0 : index
    %c0_25 = arith.constant 0 : index
    %44 = vector.load %arg9[%c0_24, %c0_25] : memref<1x128xf32, #tpu.memory_space<vmem>>, vector<1x128xf32>
    %45 = vector.broadcast %44 : vector<1x128xf32> to vector<128x128xf32>
    %46 = arith.addf %43, %45 : vector<128x128xf32>
    %cst_26 = arith.constant 0.000000e+00 : f32
    %47 = vector.broadcast %cst_26 : f32 to vector<128x128xf32>
    %48 = arith.maximumf %46, %47 : vector<128x128xf32>
    %c0_27 = arith.constant 0 : index
    %c0_28 = arith.constant 0 : index
    %49 = vector.load %arg10[%c0_27, %c0_28] : memref<128x128xf32, #tpu.memory_space<vmem>>, vector<128x128xf32>
    tpu.vector_store %arg10[%c0_27, %c0_28], %48 {strides = array<i32>} : memref<128x128xf32, #tpu.memory_space<vmem>>, vector<128x128xf32>,
    return
  }
  func.func @transform_0(%arg0: i32) -> (i32, i32) {
    %c0_i32 = arith.constant 0 : i32
    %c0_i32_0 = arith.constant 0 : i32
    return %arg0, %c0_i32 : i32, i32
  }
  func.func @transform_1(%arg0: i32) -> (i32, i32) {
    %c0_i32 = arith.constant 0 : i32
    %c0_i32_0 = arith.constant 0 : i32
    return %arg0, %c0_i32 : i32, i32
  }
  func.func @transform_2(%arg0: i32) -> (i32, i32) {
    %c0_i32 = arith.constant 0 : i32
    %c0_i32_0 = arith.constant 0 : i32
    %c0_i32_1 = arith.constant 0 : i32
    return %c0_i32, %c0_i32_0 : i32, i32
  }
  func.func @transform_3(%arg0: i32) -> (i32, i32) {
    %c0_i32 = arith.constant 0 : i32
    %c0_i32_0 = arith.constant 0 : i32
    %c0_i32_1 = arith.constant 0 : i32
    return %c0_i32, %c0_i32_0 : i32, i32
  }
  func.func @transform_4(%arg0: i32) -> (i32, i32) {
    %c0_i32 = arith.constant 0 : i32
    %c0_i32_0 = arith.constant 0 : i32
    %c0_i32_1 = arith.constant 0 : i32
    return %c0_i32, %c0_i32_0 : i32, i32
  }
  func.func @transform_5(%arg0: i32) -> (i32, i32) {
    %c0_i32 = arith.constant 0 : i32
    %c0_i32_0 = arith.constant 0 : i32
    %c0_i32_1 = arith.constant 0 : i32
    return %c0_i32, %c0_i32_0 : i32, i32
  }
  func.func @transform_6(%arg0: i32) -> (i32, i32) {
    %c0_i32 = arith.constant 0 : i32
    %c0_i32_0 = arith.constant 0 : i32
    %c0_i32_1 = arith.constant 0 : i32
    return %c0_i32, %c0_i32_0 : i32, i32
  }
  func.func @transform_7(%arg0: i32) -> (i32, i32) {
    %c0_i32 = arith.constant 0 : i32
    %c0_i32_0 = arith.constant 0 : i32
    %c0_i32_1 = arith.constant 0 : i32
    return %c0_i32, %c0_i32_0 : i32, i32
  }
  func.func @transform_8(%arg0: i32) -> (i32, i32) {
    %c0_i32 = arith.constant 0 : i32
    %c0_i32_0 = arith.constant 0 : i32
    %c0_i32_1 = arith.constant 0 : i32
    return %c0_i32, %c0_i32_0 : i32, i32
  }
  func.func @transform_9(%arg0: i32) -> (i32, i32) {
    %c0_i32 = arith.constant 0 : i32
    %c0_i32_0 = arith.constant 0 : i32
    return %arg0, %c0_i32 : i32, i32
  }
}

</mosaic_0001>

<bundles_post_ra>
// kernel: tpu_custom_call.1
= control target key start
LH: loop header
LB: loop body
LE: loop exit
PB: predicated region body
PF: predicated region fallthrough
CT: control target
= control target key end

     0   :  { %14 = vsyncpa [#allocation3], 0  ;;  %s2110_s0 = inlined_call_operand.vmem [shape: bf16[256,64], index: 0, kind: input, shape index: {}]   ;;  %s2111_s1 = inlined_call_operand.vmem [shape: bf16[256,64], index: 1, kind: input, shape index: {}]   ;;  %s2112_s2 = inlined_call_operand.vmem [shape: bf16[64,64], index: 2, kind: input, shape index: {}]   ;;  %s2113_s3 = inlined_call_operand.vmem [shape: f32[1,64], index: 3, kind: input, shape index: {}]   ;;  %s2114_s4 = inlined_call_operand.vmem [shape: bf16[64,64], index: 4, kind: input, shape index: {}]   ;;  %s2115_s5 = inlined_call_operand.vmem [shape: f32[1,64], index: 5, kind: input, shape index: {}]   ;;  %s2116_s6 = inlined_call_operand.vmem [shape: bf16[64,128], index: 6, kind: input, shape index: {}]   ;;  %s2117_s7 = inlined_call_operand.vmem [shape: f32[1,128], index: 7, kind: input, shape index: {}]   ;;  %s2118_s8 = inlined_call_operand.vmem [shape: f32[1,128], index: 8, kind: input, shape index: {}]   ;;  %s2119_s9 = inlined_call_operand.hbm [shape: f32[256,128], index: 9, kind: output, shape index: {}]  }
   0x1   :  { %16 = vsyncpa [#allocation3 + $0x1], 0  ;;  %s1701_s30 = smov 0   ;;  %s1703_s10 = smov 0  }
   0x2   :  { %s1705_s11 = smov 0   ;;  %s1707_s12 = smov 0  }
   0x3 LB: > { %s1722_s13 = sadd.s32 4294967295, %s1647_s12   ;;  %s1318_s14 = sadd.s32 4294967294, %s1647_s12   ;;  %s1647_s12 = sphi %s1707_s12, %s2125_s12   ;;  %s1643_s11 = sphi %s1705_s11, %s2124_s11   ;;  %s1639_s10 = sphi %s1703_s10, %s2123_s10   ;;  %s1635_s30 = sphi %s1701_s30, %s2122_s30  }
   0x4   : > { %s1726_s15 = sadd.s32 1, %s1647_s12   ;;  %s228_s16 = sadd.s32 1, %s1643_s11 }
   0x5   : > { %s225_s17 = ssub.s32 %s1647_s12, %s1726_s15  ;;  %p238_p0 = scmp.ne.s32.totalorder %s1643_s11, %s1639_s10 }
   0x6   : > { %p226_p1 = scmp.eq.s32.totalorder %s225_s17, 0  ;;  %p239_p2 = scmp.eq.s32.totalorder %s1722_s13, 1 }
   0x7   : > { %p244_p3 = scmp.ne.s32.totalorder %s1639_s10, %s1635_s30  ;;  %p245_p4 = scmp.eq.s32.totalorder %s1318_s14, 1 }
   0x8   : > { %s1737_s18 = scalar_select %p226_p1, %s1643_s11, %s228_s16  }
   0x9   : > { %p1739_p5 = por %p239_p2, %p238_p0  ;;  %p1743_p6 = por %p245_p4, %p244_p3 }
   0xa   : > { %p1321_p7 = scmp.ge.s32.totalorder %s1647_s12, 1  ;;  %p302_p8 = scmp.lt.s32.totalorder %s1647_s12, 3 }
   0xc   : > { %p303_p9 = pnand %p1321_p7, %p302_p8 }
   0xd   : > { %s1323_s23 = sshll.u32 (!%p303_p9), %s1722_s13, 4  ;;  %s340_s26 = sand.u32 (!%p303_p9), 1, %s1639_s10  }
   0xe   : > { %306 = sbr.rel (%p303_p9) target bundleno = 816 (0x330), region = 56  ;;  %p344_p10 = scmp.lt.s32.totalorder (!%p303_p9), %s1323_s23, 31 }
   0xf   : > { %s1322_s14 = sshll.u32 (!%p303_p9), %s340_s26, 7  ;;  %s1456_s17 = sshll.u32 (!%p303_p9), %s1722_s13, 7 }
  0x10   : > { %s2008_s16 = scalar_lea.vmem (!%p303_p9), [#allocation2], %s1322_s14  ;;  %s1240_s24 = scalar_lea.hbm (!%p303_p9), %s2119_s9, %s1456_s17 }
  0x11   : > { %s1241_s13 = sshll.u32 (!%p303_p9), %s2008_s16, 4  ;;  %s1243_s25 = sshll.u32 (!%p303_p9), %s1240_s24, 4  ;;  %s1242_s13 = int_to_ptr.vmem [resolvable:$true] %s1241_s13  ;;  %s1244_s25 = int_to_ptr.hbm [resolvable:$true] %s1243_s25 }
  0x12   : > { %s1605_s17 = scalar_lea.hbm (!%p303_p9), %s2119_s9, 256 }
  0x13   : > { %v1447_v0 = vld [vmem:[%s2112_s2 + $0x18] sm:$0xff]  ;;  %v1446_v1 = vld [vmem:[%s2112_s2 + $0x10] sm:$0xff]  ;;  %s2127_s23 = smov (!%p344_p10, %s1323_s23), 31  ;;  %v1445_v2 = vld [vmem:[%s2112_s2 + $0x8] sm:$0xff]  ;;  %vm465_vm0 = vcmask 523264  }
  0x14   : > { %494 = vmatpush.bf16.msra.mxu0 %v1447_v0  ;;  %1496 = vmatpush.bf16.msra.mxu3 %v1447_v0  ;;  %s1324_s28 = sshll.u32 %s2127_s23, 2  ;;  %v1444_v3 = vld [vmem:[%s2112_s2] sm:$0xff]  ;;  %v1451_v12 = vld [vmem:[%s2114_s4 + $0x18] sm:$0xff]  ;;  %v1450_v13 = vld [vmem:[%s2114_s4 + $0x10] sm:$0xff]  ;;  %s1229_s23 = scalar_lea.sflag [#allocation3], %s340_s26 }
  0x15   : > { %s347_s21 = scalar_lea.vmem %s2110_s0, %s1324_s28  ;;  %627 = vmatpush.bf16.msra.mxu1 %v1451_v12  ;;  %v1449_v14 = vld [vmem:[%s2114_s4 + $0x8] sm:$0xff]  ;;  %v1448_v15 = vld [vmem:[%s2114_s4] sm:$0xff]  ;;  %s1818_s22 = scalar_lea.vmem %s2111_s1, %s1324_s28 }
  0x16   : > { %v1436_v4 = vld [vmem:[%s347_s21] sm:$0xff]  ;;  %v1442_v5 = vld [vmem:[%s347_s21 + $0x30] sm:$0xff]  ;;  %v1437_v6 = vld [vmem:[%s347_s21 + $0x8] sm:$0xff]  ;;  %s1599_s28 = sshra.s32 %s1244_s25, 4  ;;  %s1600_s28 = int_to_ptr.hbm [resolvable:$true] %s1599_s28 }
  0x17   : > { %v1443_v7 = vld [vmem:[%s347_s21 + $0x38] sm:$0xff]  ;;  %v1438_v8 = vld [vmem:[%s347_s21 + $0x10] sm:$0xff]  ;;  %v1440_v10 = vld [vmem:[%s347_s21 + $0x20] sm:$0xff]  ;;  %s1601_s27 = scalar_lea.hbm %s1600_s28, 128  ;;  %p1606_p0 = scmp.lt.s32.totalorder %s1600_s28, %s2119_s9 }
  0x18   : > { %495 = vmatpush.bf16.msra.mxu0 %v1446_v1  ;;  %1497 = vmatpush.bf16.msra.mxu3 %v1446_v1  ;;  %v1439_v9 = vld [vmem:[%s347_s21 + $0x18] sm:$0xff]  ;;  %v1441_v11 = vld [vmem:[%s347_s21 + $0x28] sm:$0xff]  ;;  %v1549_v17 = vld [vmem:[%s2113_s3] ss:$0 sm:$0xff]  ;;  %p1602_p11 = scmp.ne.s32.totalorder %s1600_s28, %s1601_s27  ;;  %p1607_p1 = scmp.lt.s32.totalorder %s1605_s17, %s1601_s27 }
  0x19   : > { %628 = vmatpush.bf16.msra.mxu1 %v1450_v13 }
  0x1a   : > { %p1603_p12 = pnand %p1602_p11, %p1739_p5  ;;  %p1608_p2 = por %p1607_p1, %p1606_p0 }
  0x1c   : > { %496 = vmatpush.bf16.msra.mxu0 %v1445_v2  ;;  %1498 = vmatpush.bf16.msra.mxu3 %v1445_v2  ;;  %p1604_p13 = pneg %p1603_p12 }
  0x1d   : > { %629 = vmatpush.bf16.msra.mxu1 %v1449_v14 }
  0x1e   : > { %p1609_p3 = pnand %p1608_p2, %p1604_p13 }
  0x20   : > { %497 = vmatpush.bf16.msra.mxu0 %v1444_v3  ;;  %1499 = vmatpush.bf16.msra.mxu3 %v1444_v3 }
  0x21   : > { %630 = vmatpush.bf16.msra.mxu1 %v1448_v15 }
  0x23   : > { %1375 = vmatmul.msk.bf16.vlgmr.msra.gmra.mxu0 %vm465_vm0, %v1436_v4  ;;  %1381 = vmatmul.msk.bf16.vlgmr.msra.gmra.mxu3 %vm465_vm0, %v1442_v5 }
  0x24   : > { %1500 = vmatpush.bf16.msrb.mxu3 %v1451_v12  ;;  %v1452_v12 = vld [vmem:[%s2116_s6] sm:$0xff] }
  0x28   : > { %1501 = vmatpush.bf16.msrb.mxu3 %v1450_v13 }
  0x2c   : > { %1502 = vmatpush.bf16.msrb.mxu3 %v1449_v14  ;;  %v1823_v14 = vld [vmem:[%s2115_s5] ss:$0 sm:$0xff] }
  0x30   : > { %1503 = vmatpush.bf16.msrb.mxu3 %v1448_v15  ;;  %v1458_v15 = vld [vmem:[%s1818_s22] sm:$0xff]  }
  0x33   : > { %1376 = vmatmul.msk.bf16.gmra.mxu0 %vm465_vm0, %v1437_v6  ;;  %1382 = vmatmul.msk.bf16.gmra.mxu3 %vm465_vm0, %v1443_v7 }
  0x43   : > { %1377 = vmatmul.msk.bf16.gmra.mxu0 %vm465_vm0, %v1438_v8 }
  0x53   : > { %1378 = vmatmul.msk.bf16.gmra.mxu0 %vm465_vm0, %v1439_v9  ;;  %v1455_v9 = vld [vmem:[%s2116_s6 + $0x18] sm:$0xff] }
  0x54   : > { %772 = vmatpush.bf16.msra.mxu2 %v1455_v9  ;;  %1504 = vmatpush.bf16.msra.mxu3 %v1455_v9 }
  0x63   : > { %1379 = vmatmul.msk.bf16.gmra.mxu0 %vm465_vm0, %v1440_v10  ;;  %v1454_v10 = vld [vmem:[%s2116_s6 + $0x10] sm:$0xff] }
  0x64   : > { %773 = vmatpush.bf16.msra.mxu2 %v1454_v10  ;;  %1505 = vmatpush.bf16.msra.mxu3 %v1454_v10 }
  0x73   : > { %1380 = vmatmul.msk.bf16.gmra.mxu0 %vm465_vm0, %v1441_v11  ;;  %v1453_v11 = vld [vmem:[%s2116_s6 + $0x8] sm:$0xff] }
  0x74   : > { %774 = vmatpush.bf16.msra.mxu2 %v1453_v11  ;;  %1506 = vmatpush.bf16.msra.mxu3 %v1453_v11  ;;  %v1492_v11 = vld [vmem:[%s1818_s22 + $0x20] sm:$0xff]  }
  0x78   : > { %775 = vmatpush.bf16.msra.mxu2 %v1452_v12  ;;  %1507 = vmatpush.bf16.msra.mxu3 %v1452_v12  ;;  %v1475_v12 = vunpack.c.l.bf16 %v1492_v11 }
  0xa0   : > { %v499_v16 = vpop.f32.mrf.mxu0 }
  0xa1   : > { %v500_v19 = vadd.f32 %v1549_v17, %v499_v16  ;;  %v1459_v16 = vunpack.c.l.bf16 %v1458_v15 }
  0xa3   : > { %v539_v22 = vmax.f32 %v500_v19, 0.0 }
  0xa6   : > { %v529_v18 = vpop.f32.mrf.mxu3 }
  0xa7   : > { %v530_v24 = vadd.f32 %v1549_v17, %v529_v18  ;;  %v1460_v18 = vunpack.c.h.bf16 %v1458_v15  ;;  %v1476_v15 = vunpack.c.h.bf16 %v1492_v11 }
  0xa8   : > { %v501_v20 = vpop.f32.mrf.mxu0 }
  0xa9   : > { %v502_v21 = vadd.f32 %v1549_v17, %v501_v20  ;;  %v551_v27 = vmax.f32 %v530_v24, 0.0 }
  0xab   : > { %v540_v23 = vmax.f32 %v502_v21, 0.0 }
  0xad   : > { %v555_v25 = vpack.c.bf16 %v540_v23, %v539_v22 }
  0xae   : > { %v531_v26 = vpop.f32.mrf.mxu3 }
  0xaf   : > { %1399 = vmatmul.msk.bf16.vlgmr.msra.gmra.mxu1 %vm465_vm0, %v555_v25  ;;  %v532_v28 = vadd.f32 %v1549_v17, %v531_v26  ;;  %v1494_v25 = vld [vmem:[%s1818_s22 + $0x30] sm:$0xff]  }
  0xb0   : > { %v504_v29 = vpop.f32.mrf.mxu0 }
  0xb1   : > { %v552_v30 = vmax.f32 %v532_v28, 0.0  ;;  %v505_v32 = vadd.f32 %v1549_v17, %v504_v29  ;;  %v1484_v29 = vunpack.c.h.bf16 %v1494_v25 }
  0xb3   : > { %v561_v31 = vpack.c.bf16 %v552_v30, %v551_v27  ;;  %v541_v36 = vmax.f32 %v505_v32, 0.0  ;;  %v1483_v27 = vunpack.c.l.bf16 %v1494_v25  ;;  %v1489_v30 = vld [vmem:[%s1818_s22 + $0x8] sm:$0xff]  }
  0xb5   : > { %1405 = vmatmul.msk.bf16.vlgmr.msrb.gmra.mxu3 %vm465_vm0, %v561_v31 }
  0xb6   : > { %v534_v35 = vpop.f32.mrf.mxu3 }
  0xb7   : > { %v535_v39 = vadd.f32 %v1549_v17, %v534_v35 }
  0xb8   : > { %v506_v33 = vpop.f32.mrf.mxu0 }
  0xb9   : > { %v507_v34 = vadd.f32 %v1549_v17, %v506_v33  ;;  %v553_v42 = vmax.f32 %v535_v39, 0.0 }
  0xbb   : > { %v542_v37 = vmax.f32 %v507_v34, 0.0  ;;  %v1463_v34 = vunpack.c.l.bf16 %v1489_v30 }
  0xbd   : > { %v556_v38 = vpack.c.bf16 %v542_v37, %v541_v36  ;;  %v1464_v36 = vunpack.c.h.bf16 %v1489_v30 }
  0xbe   : > { %v536_v41 = vpop.f32.mrf.mxu3 }
  0xbf   : > { %1400 = vmatmul.msk.bf16.gmra.mxu1 %vm465_vm0, %v556_v38  ;;  %v537_v43 = vadd.f32 %v1549_v17, %v536_v41 }
  0xc0   : > { %v509_v40 = vpop.f32.mrf.mxu0 }
  0xc1   : > { %v554_v44 = vmax.f32 %v537_v43, 0.0  ;;  %v510_v45 = vadd.f32 %v1549_v17, %v509_v40 }
  0xc3   : > { %v562_v46 = vpack.c.bf16 %v554_v44, %v553_v42  ;;  %v543_v49 = vmax.f32 %v510_v45, 0.0 }
  0xc5   : > { %1406 = vmatmul.msk.bf16.gmra.mxu3 %vm465_vm0, %v562_v46  ;;  %v1495_v46 = vld [vmem:[%s1818_s22 + $0x38] sm:$0xff]  }
  0xc8   : > { %v511_v47 = vpop.f32.mrf.mxu0 }
  0xc9   : > { %v512_v48 = vadd.f32 %v1549_v17, %v511_v47  ;;  %v1490_v47 = vld [vmem:[%s1818_s22 + $0x10] sm:$0xff]  }
  0xcb   : > { %v544_v50 = vmax.f32 %v512_v48, 0.0  ;;  %v1487_v48 = vunpack.c.l.bf16 %v1495_v46 }
  0xcd   : > { %v557_v51 = vpack.c.bf16 %v544_v50, %v543_v49  ;;  %v1467_v50 = vunpack.c.l.bf16 %v1490_v47 }
  0xcf   : > { %1401 = vmatmul.msk.bf16.gmra.mxu1 %vm465_vm0, %v557_v51 }
  0xd0   : > { %v514_v52 = vpop.f32.mrf.mxu0 }
  0xd1   : > { %v515_v53 = vadd.f32 %v1549_v17, %v514_v52  ;;  %v1468_v52 = vunpack.c.h.bf16 %v1490_v47 }
  0xd3   : > { %v545_v56 = vmax.f32 %v515_v53, 0.0 }
  0xd8   : > { %v516_v54 = vpop.f32.mrf.mxu0 }
  0xd9   : > { %v517_v55 = vadd.f32 %v1549_v17, %v516_v54 }
  0xdb   : > { %v546_v57 = vmax.f32 %v517_v55, 0.0 }
  0xdd   : > { %v558_v58 = vpack.c.bf16 %v546_v57, %v545_v56  ;;  %v1488_v57 = vunpack.c.h.bf16 %v1495_v46  ;;  %v881_v46 = vlaneseq }
  0xdf   : > { %1402 = vmatmul.msk.bf16.gmra.mxu1 %vm465_vm0, %v558_v58 }
  0xe0   : > { %v519_v59 = vpop.f32.mrf.mxu0 }
  0xe1   : > { %v520_v60 = vadd.f32 %v1549_v17, %v519_v59 }
  0xe3   : > { %v547_v63 = vmax.f32 %v520_v60, 0.0 }
  0xe8   : > { %v521_v61 = vpop.f32.mrf.mxu0 }
  0xe9   : > { %v522_v62 = vadd.f32 %v1549_v17, %v521_v61 }
  0xeb   : > { %v548_v0 = vmax.f32 %v522_v62, 0.0 }
  0xed   : > { %v559_v1 = vpack.c.bf16 %v548_v0, %v547_v63 }
  0xef   : > { %1403 = vmatmul.msk.bf16.gmra.mxu1 %vm465_vm0, %v559_v1  ;;  %v1491_v1 = vld [vmem:[%s1818_s22 + $0x18] sm:$0xff]  }
  0xf0   : > { %v524_v2 = vpop.f32.mrf.mxu0 }
  0xf1   : > { %v525_v3 = vadd.f32 %v1549_v17, %v524_v2  ;;  %v1471_v2 = vunpack.c.l.bf16 %v1491_v1 }
  0xf3   : > { %v549_v6 = vmax.f32 %v525_v3, 0.0 }
  0xf8   : > { %v526_v4 = vpop.f32.mrf.mxu0 }
  0xf9   : > { %v527_v5 = vadd.f32 %v1549_v17, %v526_v4  ;;  %v1472_v4 = vunpack.c.h.bf16 %v1491_v1 }
  0xfb   : > { %v550_v7 = vmax.f32 %v527_v5, 0.0 }
  0xfd   : > { %v560_v8 = vpack.c.bf16 %v550_v7, %v549_v6 }
  0xff   : > { %1404 = vmatmul.msk.bf16.gmra.mxu1 %vm465_vm0, %v560_v8 }
 0x12c   : > { %v632_v13 = vpop.f32.mrf.mxu1 }
 0x12d   : > { %v633_v17 = vadd.f32 %v1823_v14, %v632_v13 }
 0x12f   : > { %v688_v21 = vmul.f32 %v1459_v16, %v633_v17 }
 0x134   : > { %v634_v19 = vpop.f32.mrf.mxu1 }
 0x135   : > { %v635_v20 = vadd.f32 %v1823_v14, %v634_v19 }
 0x137   : > { %v689_v22 = vmul.f32 %v1460_v18, %v635_v20 }
 0x138   : > { %v662_v23 = vpop.f32.mrf.mxu3 }
 0x139   : > { %v704_v24 = vpack.c.bf16 %v689_v22, %v688_v21  ;;  %v663_v28 = vadd.f32 %v1823_v14, %v662_v23  ;;  %v1493_v22 = vld [vmem:[%s1818_s22 + $0x28] sm:$0xff]  }
 0x13a   : > { %v1479_v23 = vunpack.c.l.bf16 %v1493_v22  ;;  %v1480_v25 = vunpack.c.h.bf16 %v1493_v22 }
 0x13b   : > { %1423 = vmatmul.msk.bf16.vlgmr.msra.gmra.mxu2 %vm465_vm0, %v704_v24  ;;  %v700_v32 = vmul.f32 %v1483_v27, %v663_v28 }
 0x13c   : > { %v637_v26 = vpop.f32.mrf.mxu1 }
 0x13d   : > { %v638_v35 = vadd.f32 %v1823_v14, %v637_v26 }
 0x13f   : > { %v690_v41 = vmul.f32 %v1463_v34, %v638_v35 }
 0x140   : > { %v664_v31 = vpop.f32.mrf.mxu3 }
 0x141   : > { %v665_v33 = vadd.f32 %v1823_v14, %v664_v31 }
 0x143   : > { %v701_v37 = vmul.f32 %v1484_v29, %v665_v33 }
 0x144   : > { %v639_v38 = vpop.f32.mrf.mxu1 }
 0x145   : > { %v640_v39 = vadd.f32 %v1823_v14, %v639_v38  ;;  %v710_v40 = vpack.c.bf16 %v701_v37, %v700_v32 }
 0x147   : > { %v691_v42 = vmul.f32 %v1464_v36, %v640_v39  ;;  %1429 = vmatmul.msk.bf16.vlgmr.msra.gmra.mxu3 %vm465_vm0, %v710_v40 }
 0x148   : > { %v667_v45 = vpop.f32.mrf.mxu3 }
 0x149   : > { %v705_v43 = vpack.c.bf16 %v691_v42, %v690_v41  ;;  %v668_v49 = vadd.f32 %v1823_v14, %v667_v45 }
 0x14b   : > { %1424 = vmatmul.msk.bf16.gmra.mxu2 %vm465_vm0, %v705_v43  ;;  %v702_v56 = vmul.f32 %v1487_v48, %v668_v49  ;;  %v1884_v48 = vand.u32 127, %v881_v46 }
 0x14c   : > { %v642_v44 = vpop.f32.mrf.mxu1 }
 0x14d   : > { %v643_v51 = vadd.f32 %v1823_v14, %v642_v44  ;;  %vm883_vm1 = vcmp.lt.s32.totalorder %v1884_v48, 64 }
 0x14f   : > { %v692_v59 = vmul.f32 %v1467_v50, %v643_v51 }
 0x150   : > { %v669_v54 = vpop.f32.mrf.mxu3 }
 0x151   : > { %v670_v58 = vadd.f32 %v1823_v14, %v669_v54 }
 0x153   : > { %v703_v61 = vmul.f32 %v1488_v57, %v670_v58 }
 0x154   : > { %v644_v53 = vpop.f32.mrf.mxu1 }
 0x155   : > { %v645_v55 = vadd.f32 %v1823_v14, %v644_v53  ;;  %v711_v63 = vpack.c.bf16 %v703_v61, %v702_v56 }
 0x157   : > { %v693_v60 = vmul.f32 %v1468_v52, %v645_v55  ;;  %1430 = vmatmul.msk.bf16.gmra.mxu3 %vm465_vm0, %v711_v63 }
 0x159   : > { %v706_v62 = vpack.c.bf16 %v693_v60, %v692_v59 }
 0x15b   : > { %1425 = vmatmul.msk.bf16.gmra.mxu2 %vm465_vm0, %v706_v62 }
 0x15c   : > { %v647_v0 = vpop.f32.mrf.mxu1 }
 0x15d   : > { %v648_v3 = vadd.f32 %v1823_v14, %v647_v0 }
 0x15f   : > { %v694_v7 = vmul.f32 %v1471_v2, %v648_v3 }
 0x164   : > { %v649_v5 = vpop.f32.mrf.mxu1 }
 0x165   : > { %v650_v6 = vadd.f32 %v1823_v14, %v649_v5 }
 0x167   : > { %v695_v8 = vmul.f32 %v1472_v4, %v650_v6 }
 0x169   : > { %v707_v9 = vpack.c.bf16 %v695_v8, %v694_v7 }
 0x16b   : > { %1426 = vmatmul.msk.bf16.gmra.mxu2 %vm465_vm0, %v707_v9 }
 0x16c   : > { %v652_v10 = vpop.f32.mrf.mxu1 }
 0x16d   : > { %v653_v13 = vadd.f32 %v1823_v14, %v652_v10 }
 0x16f   : > { %v696_v18 = vmul.f32 %v1475_v12, %v653_v13 }
 0x174   : > { %v654_v16 = vpop.f32.mrf.mxu1 }
 0x175   : > { %v655_v17 = vadd.f32 %v1823_v14, %v654_v16 }
 0x177   : > { %v697_v19 = vmul.f32 %v1476_v15, %v655_v17 }
 0x179   : > { %v708_v20 = vpack.c.bf16 %v697_v19, %v696_v18 }
 0x17b   : > { %1427 = vmatmul.msk.bf16.gmra.mxu2 %vm465_vm0, %v708_v20 }
 0x17c   : > { %v657_v21 = vpop.f32.mrf.mxu1 }
 0x17d   : > { %v658_v24 = vadd.f32 %v1823_v14, %v657_v21 }
 0x17f   : > { %v698_v28 = vmul.f32 %v1479_v23, %v658_v24 }
 0x184   : > { %v659_v26 = vpop.f32.mrf.mxu1 }
 0x185   : > { %v660_v27 = vadd.f32 %v1823_v14, %v659_v26 }
 0x187   : > { %v699_v29 = vmul.f32 %v1480_v25, %v660_v27 }
 0x189   : > { %v709_v30 = vpack.c.bf16 %v699_v29, %v698_v28 }
 0x18b   : > { %1428 = vmatmul.msk.bf16.gmra.mxu2 %vm465_vm0, %v709_v30 }
 0x1be   : > { %v777_v31 = vpop.f32.mrf.mxu2 }
 0x1bf   : > { %817 = vadd.xlane.f32.xlu0 %v777_v31 }
 0x1c6   : > { %v779_v32 = vpop.f32.mrf.mxu2 }
 0x1c7   : > { %819 = vadd.xlane.f32.xlu0 %v779_v32 }
 0x1ca   : > { %v807_v33 = vpop.f32.mrf.mxu3 }
 0x1ce   : > { %v782_v34 = vpop.f32.mrf.mxu2 }
 0x1cf   : > { %841 = vadd.xlane.f32.xlu0 %v807_v33  ;;  %821 = vadd.xlane.f32.xlu1 %v782_v34 }
 0x1d2   : > { %v1857_v35 = vpop.f32.mrf.mxu3 }
 0x1d6   : > { %v784_v36 = vpop.f32.mrf.mxu2 }
 0x1d7   : > { %843 = vadd.xlane.f32.xlu1 %v1857_v35 }
 0x1da   : > { %v1869_v41 = vpop.f32.mrf.mxu3 }
 0x1de   : > { %v787_v37 = vpop.f32.mrf.mxu2 }
 0x1df   : > { %823 = vadd.xlane.f32.xlu1 %v784_v36  ;;  %825 = vadd.xlane.f32.xlu2 %v787_v37 }
 0x1e2   : > { %v1874_v43 = vpop.f32.mrf.mxu3 }
 0x1e6   : > { %v789_v14 = vpop.f32.mrf.mxu2 }
 0x1e7   : > { %827 = vadd.xlane.f32.xlu2 %v789_v14 }
 0x1ee   : > { %v1860_v38 = vpop.f32.mrf.mxu2 }
 0x1ef   : > { %829 = vadd.xlane.f32.xlu0 %v1860_v38 }
 0x1f6   : > { %v1863_v39 = vpop.f32.mrf.mxu2 }
 0x1f7   : > { %831 = vadd.xlane.f32.xlu1 %v1863_v39 }
 0x1fe   : > { %v1866_v40 = vpop.f32.mrf.mxu2 }
 0x1ff   : > { %833 = vadd.xlane.f32.xlu2 %v1866_v40 }
 0x206   : > { %v1871_v42 = vpop.f32.mrf.mxu2 }
 0x207   : > { %835 = vadd.xlane.f32.xlu0 %v1871_v42 }
 0x20e   : > { %v1876_v44 = vpop.f32.mrf.mxu2 }
 0x20f   : > { %847 = vadd.xlane.f32.xlu0 %v1874_v43  ;;  %837 = vadd.xlane.f32.xlu1 %v1876_v44 }
 0x216   : > { %v1880_v45 = vpop.f32.mrf.mxu2 }
 0x217   : > { %839 = vadd.xlane.f32.xlu2 %v1880_v45 }
 0x21f   : > { %845 = vadd.xlane.f32.xlu2 %v1869_v41 }
 0x232   : > { %v818_v47 = vpop.xlane.xlu0 %817 }
 0x233   : > { %v849_v49 = vmul.f32 0.015625, %v818_v47 }
 0x235   : > { %v1886_v50 = vsub.f32 %v777_v31, %v849_v49 }
 0x237   : > { %v884_v51 = vmul.f32 %v1886_v50, %v1886_v50 }
 0x239   : > { %v900_v52 = vsel %vm883_vm1, %v884_v51, 0.0 }
 0x23a   : > { %v820_v53 = vpop.xlane.xlu0 %819  ;;  %916 = vadd.xlane.f32.xlu1 %v900_v52 }
 0x23b   : > { %v850_v54 = vmul.f32 0.015625, %v820_v53 }
 0x23d   : > { %v1893_v55 = vsub.f32 %v779_v32, %v850_v54 }
 0x23f   : > { %v885_v56 = vmul.f32 %v1893_v55, %v1893_v55 }
 0x241   : > { %v901_v57 = vsel %vm883_vm1, %v885_v56, 0.0 }
 0x242   : > { %v842_v58 = vpop.xlane.xlu0 %841  ;;  %v822_v59 = vpop.xlane.xlu1 %821  ;;  %918 = vadd.xlane.f32.xlu2 %v901_v57 }
 0x243   : > { %v861_v60 = vmul.f32 0.015625, %v842_v58  ;;  %v851_v61 = vmul.f32 0.015625, %v822_v59 }
 0x245   : > { %v1899_v62 = vsub.f32 %v807_v33, %v861_v60  ;;  %v1901_v63 = vsub.f32 %v782_v34, %v851_v61 }
 0x247   : > { %v886_v0 = vmul.f32 %v1901_v63, %v1901_v63  ;;  %v896_v1 = vmul.f32 %v1899_v62, %v1899_v62 }
 0x249   : > { %v902_v2 = vsel %vm883_vm1, %v886_v0, 0.0  ;;  %v912_v3 = vsel %vm883_vm1, %v896_v1, 0.0 }
 0x24a   : > { %v844_v4 = vpop.xlane.xlu1 %843  ;;  %920 = vadd.xlane.f32.xlu0 %v902_v2  ;;  %940 = vadd.xlane.f32.xlu1 %v912_v3 }
 0x24b   : > { %v862_v52 = vmul.f32 0.015625, %v844_v4 }
 0x24d   : > { %v1968_v57 = vsub.f32 %v1857_v35, %v862_v52 }
 0x24f   : > { %v897_v61 = vmul.f32 %v1968_v57, %v1968_v57 }
 0x251   : > { %v913_v0 = vsel %vm883_vm1, %v897_v61, 0.0 }
 0x252   : > { %v824_v5 = vpop.xlane.xlu1 %823  ;;  %v826_v6 = vpop.xlane.xlu2 %825 }
 0x253   : > { %v852_v7 = vmul.f32 0.015625, %v824_v5  ;;  %v853_v8 = vmul.f32 0.015625, %v826_v6 }
 0x255   : > { %v1911_v9 = vsub.f32 %v784_v36, %v852_v7  ;;  %v1913_v10 = vsub.f32 %v787_v37, %v853_v8 }
 0x257   : > { %v887_v11 = vmul.f32 %v1911_v9, %v1911_v9  ;;  %v888_v12 = vmul.f32 %v1913_v10, %v1913_v10 }
 0x259   : > { %v903_v13 = vsel %vm883_vm1, %v887_v11, 0.0  ;;  %v904_v15 = vsel %vm883_vm1, %v888_v12, 0.0 }
 0x25a   : > { %v828_v16 = vpop.xlane.xlu2 %827  ;;  %922 = vadd.xlane.f32.xlu1 %v903_v13  ;;  %924 = vadd.xlane.f32.xlu2 %v904_v15 }
 0x25b   : > { %v854_v17 = vmul.f32 0.015625, %v828_v16 }
 0x25d   : > { %v1923_v18 = vsub.f32 %v789_v14, %v854_v17 }
 0x25f   : > { %v889_v19 = vmul.f32 %v1923_v18, %v1923_v18 }
 0x261   : > { %v905_v20 = vsel %vm883_vm1, %v889_v19, 0.0 }
 0x262   : > { %v830_v21 = vpop.xlane.xlu0 %829  ;;  %926 = vadd.xlane.f32.xlu0 %v905_v20 }
 0x263   : > { %v855_v22 = vmul.f32 0.015625, %v830_v21 }
 0x265   : > { %v1930_v23 = vsub.f32 %v1860_v38, %v855_v22 }
 0x267   : > { %v890_v24 = vmul.f32 %v1930_v23, %v1930_v23 }
 0x269   : > { %v906_v25 = vsel %vm883_vm1, %v890_v24, 0.0 }
 0x26a   : > { %v832_v26 = vpop.xlane.xlu1 %831  ;;  %928 = vadd.xlane.f32.xlu1 %v906_v25 }
 0x26b   : > { %v856_v27 = vmul.f32 0.015625, %v832_v26 }
 0x26d   : > { %v1937_v28 = vsub.f32 %v1863_v39, %v856_v27 }
 0x26f   : > { %v891_v29 = vmul.f32 %v1937_v28, %v1937_v28 }
 0x271   : > { %v907_v30 = vsel %vm883_vm1, %v891_v29, 0.0 }
 0x272   : > { %v834_v31 = vpop.xlane.xlu2 %833  ;;  %930 = vadd.xlane.f32.xlu2 %v907_v30  ;;  %v1995_v30 = vld [vmem:[%s2117_s7] ss:$0 sm:$0xff] }
 0x273   : > { %v857_v32 = vmul.f32 0.015625, %v834_v31 }
 0x275   : > { %v1944_v33 = vsub.f32 %v1866_v40, %v857_v32 }
 0x277   : > { %v892_v34 = vmul.f32 %v1944_v33, %v1944_v33 }
 0x279   : > { %v908_v36 = vsel %vm883_vm1, %v892_v34, 0.0  ;;  %v2001_v34 = vld [vmem:[%s2118_s8] ss:$0 sm:$0xff] }
 0x27a   : > { %932 = vadd.xlane.f32.xlu0 %v908_v36  ;;  %v836_v37 = vpop.xlane.xlu0 %835 }
 0x27b   : > { %v858_v14 = vmul.f32 0.015625, %v836_v37 }
 0x27d   : > { %v1951_v38 = vsub.f32 %v1871_v42, %v858_v14 }
 0x27f   : > { %v893_v39 = vmul.f32 %v1951_v38, %v1951_v38 }
 0x281   : > { %v909_v46 = vsel %vm883_vm1, %v893_v39, 0.0 }
 0x282   : > { %v848_v40 = vpop.xlane.xlu0 %847  ;;  %934 = vadd.xlane.f32.xlu1 %v909_v46  ;;  %v838_v47 = vpop.xlane.xlu1 %837 }
 0x283   : > { %v864_v49 = vmul.f32 0.015625, %v848_v40  ;;  %v859_v51 = vmul.f32 0.015625, %v838_v47 }
 0x285   : > { %v1958_v53 = vsub.f32 %v1874_v43, %v864_v49  ;;  %v1961_v54 = vsub.f32 %v1876_v44, %v859_v51 }
 0x287   : > { %v899_v42 = vmul.f32 %v1958_v53, %v1958_v53  ;;  %v894_v56 = vmul.f32 %v1961_v54, %v1961_v54 }
 0x289   : > { %v915_v58 = vsel %vm883_vm1, %v899_v42, 0.0  ;;  %v910_v59 = vsel %vm883_vm1, %v894_v56, 0.0 }
 0x28a   : > { %946 = vadd.xlane.f32.xlu1 %v915_v58  ;;  %936 = vadd.xlane.f32.xlu2 %v910_v59  ;;  %v840_v43 = vpop.xlane.xlu2 %839 }
 0x28b   : > { %v860_v44 = vmul.f32 0.015625, %v840_v43 }
 0x28d   : > { %v1975_v60 = vsub.f32 %v1880_v45, %v860_v44 }
 0x28f   : > { %v895_v35 = vmul.f32 %v1975_v60, %v1975_v60 }
 0x291   : > { %v911_v1 = vsel %vm883_vm1, %v895_v35, 0.0 }
 0x292   : > { %942 = vadd.xlane.f32.xlu2 %v913_v0  ;;  %938 = vadd.xlane.f32.xlu0 %v911_v1  ;;  %v846_v2 = vpop.xlane.xlu2 %845 }
 0x293   : > { %v863_v3 = vmul.f32 0.015625, %v846_v2 }
 0x295   : > { %v1986_v4 = vsub.f32 %v1869_v41, %v863_v3 }
 0x297   : > { %v898_v45 = vmul.f32 %v1986_v4, %v1986_v4 }
 0x299   : > { %v914_v5 = vsel %vm883_vm1, %v898_v45, 0.0 }
 0x29a   : > { %944 = vadd.xlane.f32.xlu0 %v914_v5 }
 0x2ad   : > { %v917_v6 = vpop.xlane.xlu1 %916 }
 0x2ae   : > { %v948_v7 = vmul.f32 0.015625, %v917_v6 }
 0x2b0   : > { %v964_v8 = vadd.f32 1e-05, %v948_v7 }
 0x2b2   : > { %1553 = vrsqrt.f32 %v964_v8  ;;  %vm986_vm3 = vweird.f32 %v964_v8 }
 0x2b5   : > { %v919_v11 = vpop.xlane.xlu2 %918 }
 0x2b6   : > { %v949_v12 = vmul.f32 0.015625, %v919_v11 }
 0x2b8   : > { %v1554_v13 = vpop.eup %1553  ;;  %v965_v15 = vadd.f32 1e-05, %v949_v12 }
 0x2b9   : > { %v981_v16 = vmul.f32 %v1554_v13, %v964_v8  ;;  %vm987_vm2 = vweird.f32 %v1554_v13 }
 0x2ba   : > { %1555 = vrsqrt.f32 %v965_v15  ;;  %vm988_vm4 = vmor %vm986_vm3, %vm987_vm2  ;;  %vm996_vm6 = vweird.f32 %v965_v15 }
 0x2bb   : > { %v982_v17 = vmul.f32 %v1554_v13, %v981_v16 }
 0x2bd   : > { %v983_v41 = vmul.f32 0.5, %v982_v17  ;;  %v921_v19 = vpop.xlane.xlu0 %920  ;;  %v941_v20 = vpop.xlane.xlu1 %940 }
 0x2be   : > { %v950_v21 = vmul.f32 0.015625, %v921_v19  ;;  %v960_v22 = vmul.f32 0.015625, %v941_v20 }
 0x2bf   : > { %v984_v48 = vsub.f32 1.5, %v983_v41 }
 0x2c0   : > { %v1556_v24 = vpop.eup %1555  ;;  %v966_v25 = vadd.f32 1e-05, %v950_v21  ;;  %v976_v26 = vadd.f32 1e-05, %v960_v22 }
 0x2c1   : > { %v985_v27 = vmul.f32 %v1554_v13, %v984_v48  ;;  %v991_v29 = vmul.f32 %v1556_v24, %v965_v15  ;;  %vm997_vm5 = vweird.f32 %v1556_v24 }
 0x2c2   : > { %1557 = vrsqrt.f32 %v966_v25  ;;  %vm998_vm7 = vmor %vm996_vm6, %vm997_vm5  ;;  %vm1006_vm10 = vweird.f32 %v966_v25  ;;  %vm1106_vm12 = vweird.f32 %v976_v26 }
 0x2c3   : > { %v989_v31 = vsel %vm988_vm4, %v1554_v13, %v985_v27  ;;  %v992_v32 = vmul.f32 %v1556_v24, %v991_v29  ;;  %1559 = vrsqrt.f32 %v976_v26 }
 0x2c4   : > { %v1140_v36 = vmul.f32 %v989_v31, %v1886_v50 }
 0x2c5   : > { %v993_v37 = vmul.f32 0.5, %v992_v32 }
 0x2c6   : > { %v1160_v14 = vmul.f32 %v1995_v30, %v1140_v36 }
 0x2c7   : > { %v994_v39 = vsub.f32 1.5, %v993_v37 }
 0x2c8   : > { %v1558_v46 = vpop.eup %1557  ;;  %v1180_v40 = vadd.f32 %v2001_v34, %v1160_v14 }
 0x2c9   : > { %v1560_v47 = vpop.eup %1559  ;;  %v995_v49 = vmul.f32 %v1556_v24, %v994_v39  ;;  %v1001_v51 = vmul.f32 %v1558_v46, %v966_v25  ;;  %vm1007_vm8 = vweird.f32 %v1558_v46 }
 0x2ca   : > { %v1196_v52 = vmax.f32 %v1180_v40, 0.0  ;;  %v1101_v42 = vmul.f32 %v1560_v47, %v976_v26  ;;  %vm1107_vm9 = vweird.f32 %v1560_v47  ;;  %vm1008_vm11 = vmor %vm1006_vm10, %vm1007_vm8 }
 0x2cb   : > { %v999_v56 = vsel %vm998_vm7, %v1556_v24, %v995_v49  ;;  %v1002_v58 = vmul.f32 %v1558_v46, %v1001_v51  ;;  %vm1108_vm13 = vmor %vm1106_vm12, %vm1107_vm9 }
 0x2cc   : > { %1212 = vst [vmem:[%s2008_s16] sm:$0xff] %v1196_v52  ;;  %v1141_v50 = vmul.f32 %v999_v56, %v1893_v55  ;;  %v1102_v59 = vmul.f32 %v1560_v47, %v1101_v42 }
 0x2cd   : > { %v1003_v43 = vmul.f32 0.5, %v1002_v58  ;;  %v923_v44 = vpop.xlane.xlu1 %922  ;;  %v925_v61 = vpop.xlane.xlu2 %924 }
 0x2ce   : > { %v1161_v35 = vmul.f32 %v1995_v30, %v1141_v50  ;;  %v1103_v0 = vmul.f32 0.5, %v1102_v59  ;;  %v951_v1 = vmul.f32 0.015625, %v923_v44  ;;  %v952_v2 = vmul.f32 0.015625, %v925_v61 }
 0x2cf   : > { %v1004_v3 = vsub.f32 1.5, %v1003_v43 }
 0x2d0   : > { %v1181_v45 = vadd.f32 %v2001_v34, %v1161_v35  ;;  %v1104_v5 = vsub.f32 1.5, %v1103_v0  ;;  %v967_v6 = vadd.f32 1e-05, %v951_v1  ;;  %v968_v7 = vadd.f32 1e-05, %v952_v2 }
 0x2d1   : > { %v1005_v8 = vmul.f32 %v1558_v46, %v1004_v3 }
 0x2d2   : > { %v1197_v55 = vmax.f32 %v1181_v45, 0.0  ;;  %v1105_v11 = vmul.f32 %v1560_v47, %v1104_v5  ;;  %1561 = vrsqrt.f32 %v967_v6  ;;  %vm1016_vm0 = vweird.f32 %v967_v6 }
 0x2d3   : > { %v1009_v12 = vsel %vm1008_vm11, %v1558_v46, %v1005_v8  ;;  %1563 = vrsqrt.f32 %v968_v7  ;;  %vm1026_vm2 = vweird.f32 %v968_v7 }
 0x2d4   : > { %1213 = vst [vmem:[%s2008_s16 + $0x8] sm:$0xff] %v1197_v55  ;;  %v1142_v13 = vmul.f32 %v1009_v12, %v1901_v63  ;;  %v1109_v15 = vsel %vm1108_vm13, %v1560_v47, %v1105_v11 }
 0x2d5   : > { %v1152_v16 = vmul.f32 %v1109_v15, %v1899_v62  ;;  %v927_v17 = vpop.xlane.xlu0 %926 }
 0x2d6   : > { %v1162_v41 = vmul.f32 %v1995_v30, %v1142_v13  ;;  %v953_v19 = vmul.f32 0.015625, %v927_v17 }
 0x2d7   : > { %v1172_v20 = vmul.f32 %v1995_v30, %v1152_v16 }
 0x2d8   : > { %v1562_v21 = vpop.eup %1561  ;;  %v1182_v22 = vadd.f32 %v2001_v34, %v1162_v41  ;;  %v969_v48 = vadd.f32 1e-05, %v953_v19 }
 0x2d9   : > { %v1564_v24 = vpop.eup %1563  ;;  %v1192_v25 = vadd.f32 %v2001_v34, %v1172_v20  ;;  %v1011_v26 = vmul.f32 %v1562_v21, %v967_v6  ;;  %vm1017_vm14 = vweird.f32 %v1562_v21 }
 0x2da   : > { %v1198_v63 = vmax.f32 %v1182_v22, 0.0  ;;  %v1021_v27 = vmul.f32 %v1564_v24, %v968_v7  ;;  %1565 = vrsqrt.f32 %v969_v48  ;;  %vm1027_vm15 = vweird.f32 %v1564_v24  ;;  %vm1018_vm1 = vmor %vm1016_vm0, %vm1017_vm14 }
 0x2db   : > { %v1208_v62 = vmax.f32 %v1192_v25, 0.0  ;;  %v1012_v29 = vmul.f32 %v1562_v21, %v1011_v26  ;;  %vm1028_vm3 = vmor %vm1026_vm2, %vm1027_vm15  ;;  %vm1036_vm5 = vweird.f32 %v969_v48 }
 0x2dc   : > { %1214 = vst [vmem:[%s2008_s16 + $0x10] sm:$0xff] %v1198_v63  ;;  %v1022_v31 = vmul.f32 %v1564_v24, %v1021_v27 }
 0x2dd   : > { %1224 = vst [vmem:[%s2008_s16 + $0x60] sm:$0xff] %v1208_v62  ;;  %v1013_v32 = vmul.f32 0.5, %v1012_v29  ;;  %v929_v36 = vpop.xlane.xlu1 %928 }
 0x2de   : > { %v1023_v37 = vmul.f32 0.5, %v1022_v31  ;;  %v954_v14 = vmul.f32 0.015625, %v929_v36 }
 0x2df   : > { %v1014_v39 = vsub.f32 1.5, %v1013_v32 }
 0x2e0   : > { %v1566_v46 = vpop.eup %1565  ;;  %v1024_v40 = vsub.f32 1.5, %v1023_v37  ;;  %v970_v47 = vadd.f32 1e-05, %v954_v14 }
 0x2e1   : > { %v1015_v49 = vmul.f32 %v1562_v21, %v1014_v39  ;;  %v1031_v51 = vmul.f32 %v1566_v46, %v969_v48  ;;  %vm1037_vm4 = vweird.f32 %v1566_v46 }
 0x2e2   : > { %v1025_v52 = vmul.f32 %v1564_v24, %v1024_v40  ;;  %1567 = vrsqrt.f32 %v970_v47  ;;  %vm1038_vm6 = vmor %vm1036_vm5, %vm1037_vm4  ;;  %vm1046_vm8 = vweird.f32 %v970_v47 }
 0x2e3   : > { %v1019_v42 = vsel %vm1018_vm1, %v1562_v21, %v1015_v49  ;;  %v1032_v56 = vmul.f32 %v1566_v46, %v1031_v51 }
 0x2e4   : > { %v1143_v58 = vmul.f32 %v1019_v42, %v1911_v9  ;;  %v1029_v50 = vsel %vm1028_vm3, %v1564_v24, %v1025_v52 }
 0x2e5   : > { %v1144_v59 = vmul.f32 %v1029_v50, %v1913_v10  ;;  %v1033_v43 = vmul.f32 0.5, %v1032_v56  ;;  %v931_v44 = vpop.xlane.xlu2 %930 }
 0x2e6   : > { %v1163_v61 = vmul.f32 %v1995_v30, %v1143_v58  ;;  %v955_v35 = vmul.f32 0.015625, %v931_v44 }
 0x2e7   : > { %v1164_v0 = vmul.f32 %v1995_v30, %v1144_v59  ;;  %v1034_v1 = vsub.f32 1.5, %v1033_v43 }
 0x2e8   : > { %v1568_v2 = vpop.eup %1567  ;;  %v1183_v3 = vadd.f32 %v2001_v34, %v1163_v61  ;;  %v971_v45 = vadd.f32 1e-05, %v955_v35 }
 0x2e9   : > { %v1184_v9 = vadd.f32 %v2001_v34, %v1164_v0  ;;  %v1035_v5 = vmul.f32 %v1566_v46, %v1034_v1  ;;  %v1041_v10 = vmul.f32 %v1568_v2, %v970_v47  ;;  %vm1047_vm7 = vweird.f32 %v1568_v2 }
 0x2ea   : > { %v1199_v6 = vmax.f32 %v1183_v3, 0.0  ;;  %1569 = vrsqrt.f32 %v971_v45  ;;  %vm1048_vm9 = vmor %vm1046_vm8, %vm1047_vm7  ;;  %vm1056_vm11 = vweird.f32 %v971_v45 }
 0x2eb   : > { %v1200_v7 = vmax.f32 %v1184_v9, 0.0  ;;  %v1039_v8 = vsel %vm1038_vm6, %v1566_v46, %v1035_v5  ;;  %v1042_v55 = vmul.f32 %v1568_v2, %v1041_v10 }
 0x2ec   : > { %1215 = vst [vmem:[%s2008_s16 + $0x18] sm:$0xff] %v1199_v6  ;;  %v1145_v11 = vmul.f32 %v1039_v8, %v1923_v18 }
 0x2ed   : > { %1216 = vst [vmem:[%s2008_s16 + $0x20] sm:$0xff] %v1200_v7  ;;  %v1043_v12 = vmul.f32 0.5, %v1042_v55  ;;  %v933_v13 = vpop.xlane.xlu0 %932 }
 0x2ee   : > { %v1165_v15 = vmul.f32 %v1995_v30, %v1145_v11  ;;  %v956_v16 = vmul.f32 0.015625, %v933_v13 }
 0x2ef   : > { %v1044_v17 = vsub.f32 1.5, %v1043_v12 }
 0x2f0   : > { %v1570_v41 = vpop.eup %1569  ;;  %v1185_v19 = vadd.f32 %v2001_v34, %v1165_v15  ;;  %v972_v20 = vadd.f32 1e-05, %v956_v16 }
 0x2f1   : > { %v1045_v21 = vmul.f32 %v1568_v2, %v1044_v17  ;;  %v1051_v22 = vmul.f32 %v1570_v41, %v971_v45  ;;  %vm1057_vm10 = vweird.f32 %v1570_v41 }
 0x2f2   : > { %v1201_v48 = vmax.f32 %v1185_v19, 0.0  ;;  %1571 = vrsqrt.f32 %v972_v20  ;;  %vm1058_vm12 = vmor %vm1056_vm11, %vm1057_vm10  ;;  %vm1066_vm14 = vweird.f32 %v972_v20 }
 0x2f3   : > { %v1049_v18 = vsel %vm1048_vm9, %v1568_v2, %v1045_v21  ;;  %v1052_v24 = vmul.f32 %v1570_v41, %v1051_v22 }
 0x2f4   : > { %1217 = vst [vmem:[%s2008_s16 + $0x28] sm:$0xff] %v1201_v48  ;;  %v1146_v25 = vmul.f32 %v1049_v18, %v1930_v23 }
 0x2f5   : > { %v1053_v26 = vmul.f32 0.5, %v1052_v24  ;;  %v935_v63 = vpop.xlane.xlu1 %934 }
 0x2f6   : > { %v1166_v27 = vmul.f32 %v1995_v30, %v1146_v25  ;;  %v957_v62 = vmul.f32 0.015625, %v935_v63 }
 0x2f7   : > { %v1054_v29 = vsub.f32 1.5, %v1053_v26 }
 0x2f8   : > { %v1572_v31 = vpop.eup %1571  ;;  %v1186_v32 = vadd.f32 %v2001_v34, %v1166_v27  ;;  %v973_v36 = vadd.f32 1e-05, %v957_v62 }
 0x2f9   : > { %v1055_v37 = vmul.f32 %v1570_v41, %v1054_v29  ;;  %v1061_v14 = vmul.f32 %v1572_v31, %v972_v20  ;;  %vm1067_vm13 = vweird.f32 %v1572_v31 }
 0x2fa   : > { %v1202_v39 = vmax.f32 %v1186_v32, 0.0  ;;  %1573 = vrsqrt.f32 %v973_v36  ;;  %vm1068_vm15 = vmor %vm1066_vm14, %vm1067_vm13  ;;  %vm1076_vm1 = vweird.f32 %v973_v36 }
 0x2fb   : > { %v1059_v46 = vsel %vm1058_vm12, %v1570_v41, %v1055_v37  ;;  %v1062_v23 = vmul.f32 %v1572_v31, %v1061_v14 }
 0x2fc   : > { %1218 = vst [vmem:[%s2008_s16 + $0x30] sm:$0xff] %v1202_v39  ;;  %v1147_v40 = vmul.f32 %v1059_v46, %v1937_v28 }
 0x2fd   : > { %v1063_v47 = vmul.f32 0.5, %v1062_v23  ;;  %v947_v49 = vpop.xlane.xlu1 %946  ;;  %v937_v51 = vpop.xlane.xlu2 %936 }
 0x2fe   : > { %v1167_v52 = vmul.f32 %v1995_v30, %v1147_v40  ;;  %v963_v42 = vmul.f32 0.015625, %v947_v49  ;;  %v958_v56 = vmul.f32 0.015625, %v937_v51 }
 0x2ff   : > { %v1064_v58 = vsub.f32 1.5, %v1063_v47 }
 0x300   : > { %v1574_v50 = vpop.eup %1573  ;;  %v1187_v59 = vadd.f32 %v2001_v34, %v1167_v52  ;;  %v979_v43 = vadd.f32 1e-05, %v963_v42  ;;  %v974_v44 = vadd.f32 1e-05, %v958_v56 }
 0x301   : > { %v1065_v61 = vmul.f32 %v1572_v31, %v1064_v58  ;;  %v1071_v35 = vmul.f32 %v1574_v50, %v973_v36  ;;  %vm1077_vm0 = vweird.f32 %v1574_v50 }
 0x302   : > { %v1203_v0 = vmax.f32 %v1187_v59, 0.0  ;;  %1575 = vrsqrt.f32 %v979_v43  ;;  %vm1078_vm2 = vmor %vm1076_vm1, %vm1077_vm0  ;;  %vm1136_vm5 = vweird.f32 %v979_v43  ;;  %vm1086_vm7 = vweird.f32 %v974_v44 }
 0x303   : > { %v1069_v28 = vsel %vm1068_vm15, %v1572_v31, %v1065_v61  ;;  %v1072_v1 = vmul.f32 %v1574_v50, %v1071_v35  ;;  %1577 = vrsqrt.f32 %v974_v44 }
 0x304   : > { %1219 = vst [vmem:[%s2008_s16 + $0x38] sm:$0xff] %v1203_v0  ;;  %v1148_v2 = vmul.f32 %v1069_v28, %v1944_v33 }
 0x305   : > { %v1073_v3 = vmul.f32 0.5, %v1072_v1  ;;  %v939_v45 = vpop.xlane.xlu0 %938  ;;  %v943_v9 = vpop.xlane.xlu2 %942 }
 0x306   : > { %v1168_v5 = vmul.f32 %v1995_v30, %v1148_v2  ;;  %v959_v10 = vmul.f32 0.015625, %v939_v45  ;;  %v961_v6 = vmul.f32 0.015625, %v943_v9 }
 0x307   : > { %v1074_v7 = vsub.f32 1.5, %v1073_v3 }
 0x308   : > { %v1576_v8 = vpop.eup %1575  ;;  %v1188_v55 = vadd.f32 %v2001_v34, %v1168_v5  ;;  %v975_v11 = vadd.f32 1e-05, %v959_v10  ;;  %v2046_v12 = vadd.f32 1e-05, %v961_v6 }
 0x309   : > { %v1578_v13 = vpop.eup %1577  ;;  %v1075_v15 = vmul.f32 %v1574_v50, %v1074_v7  ;;  %v1131_v33 = vmul.f32 %v1576_v8, %v979_v43  ;;  %vm1137_vm3 = vweird.f32 %v1576_v8 }
 0x30a   : > { %v1204_v16 = vmax.f32 %v1188_v55, 0.0  ;;  %v1081_v17 = vmul.f32 %v1578_v13, %v974_v44  ;;  %1579 = vrsqrt.f32 %v975_v11  ;;  %vm1087_vm4 = vweird.f32 %v1578_v13  ;;  %vm1138_vm6 = vmor %vm1136_vm5, %vm1137_vm3 }
 0x30b   : > { %v1079_v41 = vsel %vm1078_vm2, %v1574_v50, %v1075_v15  ;;  %v1132_v19 = vmul.f32 %v1576_v8, %v1131_v33  ;;  %1581 = vrsqrt.f32 %v2046_v12  ;;  %vm1088_vm8 = vmor %vm1086_vm7, %vm1087_vm4  ;;  %vm1096_vm11 = vweird.f32 %v975_v11 }
 0x30c   : > { %1220 = vst [vmem:[%s2008_s16 + $0x40] sm:$0xff] %v1204_v16  ;;  %v1149_v20 = vmul.f32 %v1079_v41, %v1951_v38  ;;  %v1082_v21 = vmul.f32 %v1578_v13, %v1081_v17  ;;  %vm1116_vm13 = vweird.f32 %v2046_v12 }
 0x30d   : > { %v1133_v22 = vmul.f32 0.5, %v1132_v19  ;;  %v945_v48 = vpop.xlane.xlu0 %944 }
 0x30e   : > { %v1169_v18 = vmul.f32 %v1995_v30, %v1149_v20  ;;  %v1083_v24 = vmul.f32 0.5, %v1082_v21  ;;  %v962_v25 = vmul.f32 0.015625, %v945_v48 }
 0x30f   : > { %v1134_v26 = vsub.f32 1.5, %v1133_v22 }
 0x310   : > { %v1580_v63 = vpop.eup %1579  ;;  %v1189_v27 = vadd.f32 %v2001_v34, %v1169_v18  ;;  %v1084_v62 = vsub.f32 1.5, %v1083_v24  ;;  %v978_v29 = vadd.f32 1e-05, %v962_v25 }
 0x311   : > { %v1582_v31 = vpop.eup %1581  ;;  %v1135_v32 = vmul.f32 %v1576_v8, %v1134_v26  ;;  %v1091_v38 = vmul.f32 %v1580_v63, %v975_v11  ;;  %vm1097_vm9 = vweird.f32 %v1580_v63 }
 0x312   : > { %v1205_v36 = vmax.f32 %v1189_v27, 0.0  ;;  %v1085_v37 = vmul.f32 %v1578_v13, %v1084_v62  ;;  %v1111_v14 = vmul.f32 %v1582_v31, %v2046_v12  ;;  %1583 = vrsqrt.f32 %v978_v29  ;;  %vm1098_vm12 = vmor %vm1096_vm11, %vm1097_vm9 }
 0x313   : > { %v1139_v39 = vsel %vm1138_vm6, %v1576_v8, %v1135_v32  ;;  %v1092_v46 = vmul.f32 %v1580_v63, %v1091_v38  ;;  %vm1117_vm10 = vweird.f32 %v1582_v31  ;;  %vm1126_vm0 = vweird.f32 %v978_v29 }
 0x314   : > { %1221 = vst [vmem:[%s2008_s16 + $0x48] sm:$0xff] %v1205_v36  ;;  %v1155_v23 = vmul.f32 %v1139_v39, %v1958_v53  ;;  %v1089_v40 = vsel %vm1088_vm8, %v1578_v13, %v1085_v37  ;;  %v1112_v47 = vmul.f32 %v1582_v31, %v1111_v14  ;;  %vm1118_vm14 = vmor %vm1116_vm13, %vm1117_vm10 }
 0x315   : > { %v1150_v49 = vmul.f32 %v1089_v40, %v1961_v54  ;;  %v1093_v51 = vmul.f32 0.5, %v1092_v46 }
 0x316   : > { %v1175_v52 = vmul.f32 %v1995_v30, %v1155_v23  ;;  %v1113_v42 = vmul.f32 0.5, %v1112_v47 }
 0x317   : > { %v1170_v56 = vmul.f32 %v1995_v30, %v1150_v49  ;;  %v1094_v58 = vsub.f32 1.5, %v1093_v51 }
 0x318   : > { %v1195_v50 = vadd.f32 %v2001_v34, %v1175_v52  ;;  %v1114_v59 = vsub.f32 1.5, %v1113_v42  ;;  %v1584_v43 = vpop.eup %1583 }
 0x319   : > { %v1190_v53 = vadd.f32 %v2001_v34, %v1170_v56  ;;  %v1095_v44 = vmul.f32 %v1580_v63, %v1094_v58  ;;  %v1121_v35 = vmul.f32 %v1584_v43, %v978_v29  ;;  %vm1127_vm15 = vweird.f32 %v1584_v43 }
 0x31a   : > { %v1211_v54 = vmax.f32 %v1195_v50, 0.0  ;;  %v1115_v61 = vmul.f32 %v1582_v31, %v1114_v59  ;;  %vm1128_vm1 = vmor %vm1126_vm0, %vm1127_vm15 }
 0x31b   : > { %v1206_v0 = vmax.f32 %v1190_v53, 0.0  ;;  %v1099_v28 = vsel %vm1098_vm12, %v1580_v63, %v1095_v44  ;;  %v1122_v3 = vmul.f32 %v1584_v43, %v1121_v35 }
 0x31c   : > { %1227 = vst [vmem:[%s2008_s16 + $0x78] sm:$0xff] %v1211_v54  ;;  %v1151_v1 = vmul.f32 %v1099_v28, %v1975_v60  ;;  %v1119_v2 = vsel %vm1118_vm14, %v1582_v31, %v1115_v61 }
 0x31d   : > { %1222 = vst [vmem:[%s2008_s16 + $0x50] sm:$0xff] %v1206_v0  ;;  %v1153_v45 = vmul.f32 %v1119_v2, %v1968_v57  ;;  %v1123_v5 = vmul.f32 0.5, %v1122_v3 }
 0x31e   : > { %v1171_v9 = vmul.f32 %v1995_v30, %v1151_v1 }
 0x31f   : > { %v1173_v10 = vmul.f32 %v1995_v30, %v1153_v45  ;;  %v1124_v7 = vsub.f32 1.5, %v1123_v5 }
 0x320   : > { %v1191_v6 = vadd.f32 %v2001_v34, %v1171_v9 }
 0x321   : > { %v1193_v8 = vadd.f32 %v2001_v34, %v1173_v10  ;;  %v1125_v55 = vmul.f32 %v1584_v43, %v1124_v7 }
 0x322   : > { %v1207_v60 = vmax.f32 %v1191_v6, 0.0 }
 0x323   : > { %v1209_v57 = vmax.f32 %v1193_v8, 0.0  ;;  %v1129_v11 = vsel %vm1128_vm1, %v1584_v43, %v1125_v55 }
 0x324   : > { %1223 = vst [vmem:[%s2008_s16 + $0x58] sm:$0xff] %v1207_v60  ;;  %v1154_v12 = vmul.f32 %v1129_v11, %v1986_v4 }
 0x325   : > { %1225 = vst [vmem:[%s2008_s16 + $0x68] sm:$0xff] %v1209_v57 }
 0x326   : > { %v1174_v13 = vmul.f32 %v1995_v30, %v1154_v12 }
 0x328   : > { %v1194_v15 = vadd.f32 %v2001_v34, %v1174_v13 }
 0x32a   : > { %v1210_v33 = vmax.f32 %v1194_v15, 0.0 }
 0x32c   : > { %1226 = vst [vmem:[%s2008_s16 + $0x70] sm:$0xff] %v1210_v33 }
 0x32d   : > { %1612 = shalt.err (!%p1609_p3)
}
 0x32e   : > { %s1649_s26 = smov 128   ;;  %s1650_s16 = smov 8  }
 0x32f   : > { %1508 = dma.vmem_to_hbm [thread:$0]  (%p1739_p5), %s1242_s13, 2048, %s1244_s25, %s1229_s23, %s1649_s26, %s1649_s26, %s1650_s16  }
 0x330 PF: > { %p1514_p4 = scmp.ge.s32.totalorder %s1647_s12, 2  ;;  %s1258_s24 = sand.u32 1, %s1635_s30  }
 0x331   : > { %s1259_s29 = scalar_lea.sflag [#allocation3], %s1258_s24 }
 0x332   : > { %p1511_p7 = pnand %p1514_p4, %p1743_p6 }
 0x334   : > { %p1512_p8 = pneg %p1511_p7 }
 0x336   : > { %1630 = dma.done.wait (%p1512_p8), %s1259_s29, 2048  }
 0x337   : > { %1632 = vsyncadd (%p1512_p8), %s1259_s29, 4294965248  ;;  %p19_p9 = scmp.ge.s32.totalorder %s1726_s15, 4   ;;  %s2122_s30 = smov %s1639_s10 }
 0x338   : > { %s2123_s10 = smov %s1643_s11  ;;  %s2124_s11 = smov %s1737_s18 }
 0x339   : > { %s2125_s12 = smov %s1726_s15  ;;  %21 = sbr.rel (!%p19_p9) target bundleno = 3 (0x3), region = 94 }
 0x33e   :  { %1265 = vsyncpa [#allocation3], 1 }
 0x33f   :  { %1267 = vsyncpa [#allocation3 + $0x1], 1 }

</bundles_post_ra>
